<compile_context>
chip_gen: v7x
topology: tpu7x:2x2x1
jax: 0.10.0
libtpu: 0.0.40
codegen_flags: <defaults>
</compile_context>

<pallas_src>
import functools

import jax
import jax.numpy as jnp
import numpy as np
from jax import lax
from jax.experimental import pallas as pl
from jax.experimental.pallas import tpu as pltpu

_R_SUN_MM = 695.7  # 1 solar radius in Mm (astropy: R_sun = 6.957e8 m)
_ROW_ALIGN = 16    # multiple of both the f32 (8,128) and bf16 (16,128) tiles


def _round_up(x, m):
    return (x + m - 1) // m * m


def _device_defaults():
    """(block_rows, num_shards) tuned per TPU generation (conservative fallback)."""
    try:
        kind = jax.devices()[0].device_kind.lower()
    except Exception:  # pragma: no cover - defensive
        kind = ""
    is_v7 = ("v7" in kind) or ("tpu7" in kind)
    is_v5e = ("v5 lite" in kind) or ("v5e" in kind) or ("v5lite" in kind)
    block_rows = 512 if is_v5e else 1024   # 1024 rows ~ 7.9 MiB/block (f32)
    num_shards = 2 if is_v7 else 1         # megacore shard axis only on v7x
    return block_rows, num_shards


def _make_kernel(base_radius_ds: float):
    def kernel(x_ref, out_ref):
        # out_ref is the (8, 128) partial-sum block for this shard; it stays
        # VMEM-resident across the inner ("arbitrary") grid axis.
        @pl.when(pl.program_id(1) == 0)
        def _():
            out_ref[...] = jnp.zeros_like(out_ref)

        def ch(i):
            v = x_ref[i]
            return v if v.dtype == jnp.float32 else v.astype(jnp.float32)

        bx, by, bz = ch(0), ch(1), ch(2)
        dBx_dx, dBx_dy, dBx_dz = ch(3), ch(4), ch(5)
        dBy_dx, dBy_dy, dBy_dz = ch(6), ch(7), ch(8)
        dBz_dx, dBz_dy, dBz_dz = ch(9), ch(10), ch(11)
        x, y, z = ch(12), ch(13), ch(14)

        # Energy gradient.  The factor 2 (and 1/solar_radius^2) are applied
        # once to the final scalar in the wrapper.
        dE_dx = bx * dBx_dx + by * dBy_dx + bz * dBz_dx
        dE_dy = bx * dBx_dy + by * dBy_dy + bz * dBz_dy
        dE_dz = bx * dBx_dz + by * dBy_dz + bz * dBz_dz

        rho2 = x * x + y * y
        r2 = rho2 + z * z
        inv_r = jnp.where(r2 > 0.0, lax.rsqrt(r2), 0.0)          # EUP
        inv_rho = lax.rsqrt(jnp.where(rho2 > 0.0, rho2, 1.0))    # EUP
        cos_p = jnp.where(rho2 > 0.0, x * inv_rho, 1.0)          # cos(atan2(y,x))
        r = r2 * inv_r

        # sin(t)*cos(p) = x/r, sin(t)*sin(p) = y/r.  cos(p) (not cos(t)) on the
        # dE_dz term replicates the original module verbatim.
        dE_dr = (x * dE_dx + y * dE_dy) * inv_r + cos_p * dE_dz

        rw = jnp.maximum(r - base_radius_ds, 0.0)   # 1/solar_radius hoisted out
        reg = jnp.maximum(dE_dr, 0.0) * rw * rw

        # Sublane-fold to (8, 128) and accumulate elementwise (pure VPU adds);
        # the single cross-lane reduction happens once, in the wrapper.
        out_ref[...] += jnp.sum(reg.reshape(-1, 8, 128), axis=0)

    return kernel


@functools.partial(
    jax.jit,
    static_argnames=("base_radius_ds", "inv_solar_ds", "block_rows",
                     "num_shards", "packed_dtype"),
)
def _energy_gradient_loss_impl(b, jac_matrix, coords, *, base_radius_ds,
                               inv_solar_ds, block_rows, num_shards,
                               packed_dtype):
    n = b.shape[0]
    itemsize = int(np.dtype(packed_dtype).itemsize)

    rows_needed = max(1, -(-n // 128))
    block_rows = max(_ROW_ALIGN,
                     min(int(block_rows), _round_up(rows_needed, _ROW_ALIGN)))
    block_rows = _round_up(block_rows, _ROW_ALIGN)
    blocks_per_shard = max(1, -(-rows_needed // (block_rows * num_shards)))
    padded_rows = block_rows * num_shards * blocks_per_shard
    n_pad = padded_rows * 128

    # Channel-major pack [15, rows, 128] as a single fused strided stack
    # (one pass over the inputs) instead of concat -> transpose (two passes).
    # TODO(synk): emit this layout upstream to remove the repack pass entirely.
    bf = jnp.asarray(b, jnp.float32).reshape(n, 3)
    jf = jnp.asarray(jac_matrix, jnp.float32).reshape(n, 9)
    cf = jnp.asarray(coords, jnp.float32).reshape(n, 3)
    chans = ([bf[:, i] for i in range(3)]
             + [jf[:, i] for i in range(9)]
             + [cf[:, i] for i in range(3)])
    packed = jnp.stack(chans, axis=0).astype(packed_dtype)          # [15, N]
    packed = jnp.pad(packed, ((0, 0), (0, n_pad - n)))
    packed = packed.reshape(15, padded_rows, 128)

    kernel = _make_kernel(base_radius_ds)

    in_block_bytes = 15 * block_rows * 128 * itemsize
    # Double-buffered input + output block + headroom; explicit so v5e's 16 MiB
    # default scoped VMEM never truncates the pipeline at 1024-row blocks.
    vmem_limit = int(max(2 * in_block_bytes + (4 << 20), 20 << 20))
    cost = pl.CostEstimate(
        flops=40 * n_pad,
        transcendentals=2 * n_pad,
        bytes_accessed=15 * n_pad * itemsize + num_shards * 8 * 128 * 4,
    )

    partial_sums = pl.pallas_call(
        kernel,
        out_shape=jax.ShapeDtypeStruct((num_shards, 8, 128), jnp.float32),
        grid_spec=pltpu.PrefetchScalarGridSpec(
            num_scalar_prefetch=0,
            grid=(num_shards, blocks_per_shard),
            in_specs=[
                pl.BlockSpec(
                    (15, block_rows, 128),
                    lambda s, i: (0, s * blocks_per_shard + i, 0),
                ),
            ],
            out_specs=pl.BlockSpec((None, 8, 128), lambda s, i: (s, 0, 0)),
        ),
        compiler_params=pltpu.CompilerParams(
            dimension_semantics=("parallel", "arbitrary"),
            vmem_limit_bytes=vmem_limit,
        ),
        cost_estimate=cost,
    )(packed)

    # Factor 2 (from dE_d*), 1/solar_radius^2 and the mean are applied once.
    return partial_sums.sum() * (2.0 * inv_solar_ds * inv_solar_ds / n)


def energy_gradient_loss(b, jac_matrix, coords, *, base_radius, Mm_per_ds,
                         block_rows=None, num_shards=None,
                         packed_dtype=jnp.float32):
    """Pallas implementation of EnergyGradientLoss.forward.

    b:          [N, 3]     magnetic field
    jac_matrix: [N, 3, 3]  jac_matrix[:, i, j] = dB_i / dx_j
    coords:     [N, 3]     cartesian coordinates
    packed_dtype: dtype of the streamed slab (bf16 halves HBM traffic;
                  in-kernel math stays f32).
    returns:    scalar f32
    """
    base_radius_ds = float(base_radius) * _R_SUN_MM / float(Mm_per_ds)
    inv_solar_ds = float(Mm_per_ds) / _R_SUN_MM   # 1 / (solar radius in ds units)
    dflt_rows, dflt_shards = _device_defaults()
    if block_rows is None:
        block_rows = dflt_rows
    if num_shards is None:
        num_shards = dflt_shards
    return _energy_gradient_loss_impl(
        b, jac_matrix, coords,
        base_radius_ds=base_radius_ds, inv_solar_ds=inv_solar_ds,
        block_rows=int(block_rows), num_shards=int(num_shards),
        packed_dtype=packed_dtype)


def _reference_loss(b, jac, coords, base_radius, Mm_per_ds):
    """Pure-JAX transcription of the PyTorch forward (for validation)."""
    base_radius_ds = base_radius * _R_SUN_MM / Mm_per_ds
    solar_radius_ds = 1.0 * _R_SUN_MM / Mm_per_ds
    dE_dx = 2 * (b[:, 0] * jac[:, 0, 0] + b[:, 1] * jac[:, 1, 0] + b[:, 2] * jac[:, 2, 0])
    dE_dy = 2 * (b[:, 0] * jac[:, 0, 1] + b[:, 1] * jac[:, 1, 1] + b[:, 2] * jac[:, 2, 1])
    dE_dz = 2 * (b[:, 0] * jac[:, 0, 2] + b[:, 1] * jac[:, 1, 2] + b[:, 2] * jac[:, 2, 2])
    r = jnp.sqrt((coords ** 2).sum(-1))
    t = jnp.arccos(coords[:, 2] / r)
    p = jnp.arctan2(coords[:, 1], coords[:, 0])
    dE_dr = jnp.sin(t) * jnp.cos(p) * dE_dx + jnp.sin(t) * jnp.sin(p) * dE_dy + jnp.cos(p) * dE_dz
    rw = jnp.clip(r - base_radius_ds, 0.0) / solar_radius_ds
    return (jax.nn.relu(dE_dr) * rw ** 2).mean()


if __name__ == "__main__":
    key = jax.random.PRNGKey(0)
    kb, kj, kc = jax.random.split(key, 3)

    N = 1000  # deliberately not a multiple of 128 to exercise the tail padding
    b = jax.random.normal(kb, (N, 3), dtype=jnp.float32)
    jac = jax.random.normal(kj, (N, 3, 3), dtype=jnp.float32)
    # coords with radii spread around the base radius (in ds units)
    coords = jax.random.normal(kc, (N, 3), dtype=jnp.float32) * 1.5

    base_radius = 1.1          # in solar radii
    Mm_per_ds = _R_SUN_MM      # so 1 ds unit == 1 solar radius

    ref = jax.block_until_ready(_reference_loss(b, jac, coords, base_radius, Mm_per_ds))

    # f32 slab: exact-semantics path.
    out = energy_gradient_loss(
        b, jac, coords, base_radius=base_radius, Mm_per_ds=Mm_per_ds
    )
    out = jax.block_until_ready(out)
    assert jnp.isfinite(out), "kernel produced non-finite loss"
    assert jnp.allclose(out, ref, rtol=1e-4, atol=1e-5), (out, ref)

    # bf16 slab: halves HBM traffic on the bandwidth-bound path; looser check.
    out_bf16 = energy_gradient_loss(
        b, jac, coords, base_radius=base_radius, Mm_per_ds=Mm_per_ds,
        packed_dtype=jnp.bfloat16,
    )
    out_bf16 = jax.block_until_ready(out_bf16)
    assert jnp.isfinite(out_bf16), "bf16 kernel produced non-finite loss"
    assert jnp.allclose(out_bf16, ref, rtol=1e-1, atol=1e-3), (out_bf16, ref)

    print("KERNEL_OK")
</pallas_src>

<mosaic_0001>
module attributes {stable_mosaic.version = 11 : i64} {
  func.func @kernel(%arg0: i32, %arg1: i32, %arg2: memref<15x16x128xf32, #tpu.memory_space<vmem>>, %arg3: memref<1x8x128xf32, #tpu.memory_space<vmem>>) attributes {dimension_semantics = [#tpu.dimension_semantics<parallel>, #tpu.dimension_semantics<arbitrary>], iteration_bounds = array<i64: 1, 1>, scalar_prefetch = 0 : i64, scratch_operands = 0 : i64, tpu.core_type = #tpu.core_type<tc>, window_params = [{transform_indices = @transform_0, window_bounds = array<i64: 15, 16, 128>}, {transform_indices = @transform_1, window_bounds = array<i64: 1, 8, 128>}]} {
    %c0_i32 = arith.constant 0 : i32
    %0 = arith.cmpi eq, %arg1, %c0_i32 : i32
    %1 = arith.extui %0 : i1 to i32
    %c0_i32_0 = arith.constant 0 : i32
    %2 = arith.cmpi ne, %1, %c0_i32_0 : i32
    scf.if %2 {
      %cst_46 = arith.constant 0.000000e+00 : f32
      %91 = vector.broadcast %cst_46 : f32 to vector<8x128xf32>
      %c0_47 = arith.constant 0 : index
      %c0_48 = arith.constant 0 : index
      %c0_49 = arith.constant 0 : index
      %92 = vector.load %arg3[%c0_47, %c0_48, %c0_49] : memref<1x8x128xf32, #tpu.memory_space<vmem>>, vector<1x8x128xf32>
      %93 = vector.shape_cast %92 : vector<1x8x128xf32> to vector<8x128xf32>
      %94 = vector.shape_cast %91 : vector<8x128xf32> to vector<1x8x128xf32>
      tpu.vector_store %arg3[%c0_47, %c0_48, %c0_49], %94 {strides = array<i32>} : memref<1x8x128xf32, #tpu.memory_space<vmem>>, vector<1x8x128xf32>,
    } else {
    }
    %c0 = arith.constant 0 : index
    %c0_1 = arith.constant 0 : index
    %c0_2 = arith.constant 0 : index
    %3 = vector.load %arg2[%c0, %c0_1, %c0_2] : memref<15x16x128xf32, #tpu.memory_space<vmem>>, vector<1x16x128xf32>
    %4 = vector.shape_cast %3 : vector<1x16x128xf32> to vector<16x128xf32>
    %c1 = arith.constant 1 : index
    %c0_3 = arith.constant 0 : index
    %c0_4 = arith.constant 0 : index
    %5 = vector.load %arg2[%c1, %c0_3, %c0_4] : memref<15x16x128xf32, #tpu.memory_space<vmem>>, vector<1x16x128xf32>
    %6 = vector.shape_cast %5 : vector<1x16x128xf32> to vector<16x128xf32>
    %c2 = arith.constant 2 : index
    %c0_5 = arith.constant 0 : index
    %c0_6 = arith.constant 0 : index
    %7 = vector.load %arg2[%c2, %c0_5, %c0_6] : memref<15x16x128xf32, #tpu.memory_space<vmem>>, vector<1x16x128xf32>
    %8 = vector.shape_cast %7 : vector<1x16x128xf32> to vector<16x128xf32>
    %c3 = arith.constant 3 : index
    %c0_7 = arith.constant 0 : index
    %c0_8 = arith.constant 0 : index
    %9 = vector.load %arg2[%c3, %c0_7, %c0_8] : memref<15x16x128xf32, #tpu.memory_space<vmem>>, vector<1x16x128xf32>
    %10 = vector.shape_cast %9 : vector<1x16x128xf32> to vector<16x128xf32>
    %c4 = arith.constant 4 : index
    %c0_9 = arith.constant 0 : index
    %c0_10 = arith.constant 0 : index
    %11 = vector.load %arg2[%c4, %c0_9, %c0_10] : memref<15x16x128xf32, #tpu.memory_space<vmem>>, vector<1x16x128xf32>
    %12 = vector.shape_cast %11 : vector<1x16x128xf32> to vector<16x128xf32>
    %c5 = arith.constant 5 : index
    %c0_11 = arith.constant 0 : index
    %c0_12 = arith.constant 0 : index
    %13 = vector.load %arg2[%c5, %c0_11, %c0_12] : memref<15x16x128xf32, #tpu.memory_space<vmem>>, vector<1x16x128xf32>
    %14 = vector.shape_cast %13 : vector<1x16x128xf32> to vector<16x128xf32>
    %c6 = arith.constant 6 : index
    %c0_13 = arith.constant 0 : index
    %c0_14 = arith.constant 0 : index
    %15 = vector.load %arg2[%c6, %c0_13, %c0_14] : memref<15x16x128xf32, #tpu.memory_space<vmem>>, vector<1x16x128xf32>
    %16 = vector.shape_cast %15 : vector<1x16x128xf32> to vector<16x128xf32>
    %c7 = arith.constant 7 : index
    %c0_15 = arith.constant 0 : index
    %c0_16 = arith.constant 0 : index
    %17 = vector.load %arg2[%c7, %c0_15, %c0_16] : memref<15x16x128xf32, #tpu.memory_space<vmem>>, vector<1x16x128xf32>
    %18 = vector.shape_cast %17 : vector<1x16x128xf32> to vector<16x128xf32>
    %c8 = arith.constant 8 : index
    %c0_17 = arith.constant 0 : index
    %c0_18 = arith.constant 0 : index
    %19 = vector.load %arg2[%c8, %c0_17, %c0_18] : memref<15x16x128xf32, #tpu.memory_space<vmem>>, vector<1x16x128xf32>
    %20 = vector.shape_cast %19 : vector<1x16x128xf32> to vector<16x128xf32>
    %c9 = arith.constant 9 : index
    %c0_19 = arith.constant 0 : index
    %c0_20 = arith.constant 0 : index
    %21 = vector.load %arg2[%c9, %c0_19, %c0_20] : memref<15x16x128xf32, #tpu.memory_space<vmem>>, vector<1x16x128xf32>
    %22 = vector.shape_cast %21 : vector<1x16x128xf32> to vector<16x128xf32>
    %c10 = arith.constant 10 : index
    %c0_21 = arith.constant 0 : index
    %c0_22 = arith.constant 0 : index
    %23 = vector.load %arg2[%c10, %c0_21, %c0_22] : memref<15x16x128xf32, #tpu.memory_space<vmem>>, vector<1x16x128xf32>
    %24 = vector.shape_cast %23 : vector<1x16x128xf32> to vector<16x128xf32>
    %c11 = arith.constant 11 : index
    %c0_23 = arith.constant 0 : index
    %c0_24 = arith.constant 0 : index
    %25 = vector.load %arg2[%c11, %c0_23, %c0_24] : memref<15x16x128xf32, #tpu.memory_space<vmem>>, vector<1x16x128xf32>
    %26 = vector.shape_cast %25 : vector<1x16x128xf32> to vector<16x128xf32>
    %c12 = arith.constant 12 : index
    %c0_25 = arith.constant 0 : index
    %c0_26 = arith.constant 0 : index
    %27 = vector.load %arg2[%c12, %c0_25, %c0_26] : memref<15x16x128xf32, #tpu.memory_space<vmem>>, vector<1x16x128xf32>
    %28 = vector.shape_cast %27 : vector<1x16x128xf32> to vector<16x128xf32>
    %c13 = arith.constant 13 : index
    %c0_27 = arith.constant 0 : index
    %c0_28 = arith.constant 0 : index
    %29 = vector.load %arg2[%c13, %c0_27, %c0_28] : memref<15x16x128xf32, #tpu.memory_space<vmem>>, vector<1x16x128xf32>
    %30 = vector.shape_cast %29 : vector<1x16x128xf32> to vector<16x128xf32>
    %c14 = arith.constant 14 : index
    %c0_29 = arith.constant 0 : index
    %c0_30 = arith.constant 0 : index
    %31 = vector.load %arg2[%c14, %c0_29, %c0_30] : memref<15x16x128xf32, #tpu.memory_space<vmem>>, vector<1x16x128xf32>
    %32 = vector.shape_cast %31 : vector<1x16x128xf32> to vector<16x128xf32>
    %33 = arith.mulf %4, %10 : vector<16x128xf32>
    %34 = arith.mulf %6, %16 : vector<16x128xf32>
    %35 = arith.addf %33, %34 : vector<16x128xf32>
    %36 = arith.mulf %8, %22 : vector<16x128xf32>
    %37 = arith.addf %35, %36 : vector<16x128xf32>
    %38 = arith.mulf %4, %12 : vector<16x128xf32>
    %39 = arith.mulf %6, %18 : vector<16x128xf32>
    %40 = arith.addf %38, %39 : vector<16x128xf32>
    %41 = arith.mulf %8, %24 : vector<16x128xf32>
    %42 = arith.addf %40, %41 : vector<16x128xf32>
    %43 = arith.mulf %4, %14 : vector<16x128xf32>
    %44 = arith.mulf %6, %20 : vector<16x128xf32>
    %45 = arith.addf %43, %44 : vector<16x128xf32>
    %46 = arith.mulf %8, %26 : vector<16x128xf32>
    %47 = arith.addf %45, %46 : vector<16x128xf32>
    %48 = arith.mulf %28, %28 : vector<16x128xf32>
    %49 = arith.mulf %30, %30 : vector<16x128xf32>
    %50 = arith.addf %48, %49 : vector<16x128xf32>
    %51 = arith.mulf %32, %32 : vector<16x128xf32>
    %52 = arith.addf %50, %51 : vector<16x128xf32>
    %cst = arith.constant 0.000000e+00 : f32
    %53 = vector.broadcast %cst : f32 to vector<16x128xf32>
    %54 = arith.cmpf ogt, %52, %53 : vector<16x128xf32>
    %55 = math.rsqrt %52 : vector<16x128xf32>
    %cst_31 = arith.constant 0.000000e+00 : f32
    %56 = vector.broadcast %cst_31 : f32 to vector<16x128xf32>
    %57 = arith.select %54, %55, %56 : vector<16x128xi1>, vector<16x128xf32>
    %cst_32 = arith.constant 0.000000e+00 : f32
    %58 = vector.broadcast %cst_32 : f32 to vector<16x128xf32>
    %59 = arith.cmpf ogt, %50, %58 : vector<16x128xf32>
    %cst_33 = arith.constant 1.000000e+00 : f32
    %60 = vector.broadcast %cst_33 : f32 to vector<16x128xf32>
    %61 = arith.select %59, %50, %60 : vector<16x128xi1>, vector<16x128xf32>
    %62 = math.rsqrt %61 : vector<16x128xf32>
    %cst_34 = arith.constant 0.000000e+00 : f32
    %63 = vector.broadcast %cst_34 : f32 to vector<16x128xf32>
    %64 = arith.cmpf ogt, %50, %63 : vector<16x128xf32>
    %65 = arith.mulf %28, %62 : vector<16x128xf32>
    %cst_35 = arith.constant 1.000000e+00 : f32
    %66 = vector.broadcast %cst_35 : f32 to vector<16x128xf32>
    %67 = arith.select %64, %65, %66 : vector<16x128xi1>, vector<16x128xf32>
    %68 = arith.mulf %52, %57 : vector<16x128xf32>
    %69 = arith.mulf %28, %37 : vector<16x128xf32>
    %70 = arith.mulf %30, %42 : vector<16x128xf32>
    %71 = arith.addf %69, %70 : vector<16x128xf32>
    %72 = arith.mulf %71, %57 : vector<16x128xf32>
    %73 = arith.mulf %67, %47 : vector<16x128xf32>
    %74 = arith.addf %72, %73 : vector<16x128xf32>
    %cst_36 = arith.constant 1.100000e+00 : f32
    %75 = vector.broadcast %cst_36 : f32 to vector<16x128xf32>
    %76 = arith.subf %68, %75 : vector<16x128xf32>
    %cst_37 = arith.constant 0.000000e+00 : f32
    %77 = vector.broadcast %cst_37 : f32 to vector<16x128xf32>
    %78 = arith.maximumf %76, %77 : vector<16x128xf32>
    %cst_38 = arith.constant 0.000000e+00 : f32
    %79 = vector.broadcast %cst_38 : f32 to vector<16x128xf32>
    %80 = arith.maximumf %74, %79 : vector<16x128xf32>
    %81 = arith.mulf %80, %78 : vector<16x128xf32>
    %82 = arith.mulf %81, %78 : vector<16x128xf32>
    %c0_39 = arith.constant 0 : index
    %c0_40 = arith.constant 0 : index
    %c0_41 = arith.constant 0 : index
    %83 = vector.load %arg3[%c0_39, %c0_40, %c0_41] : memref<1x8x128xf32, #tpu.memory_space<vmem>>, vector<1x8x128xf32>
    %84 = vector.shape_cast %83 : vector<1x8x128xf32> to vector<8x128xf32>
    %85 = vector.shape_cast %82 : vector<16x128xf32> to vector<2x8x128xf32>
    %cst_42 = arith.constant dense<0.000000e+00> : vector<8x128xf32>
    %86 = vector.multi_reduction <add>, %85, %cst_42 [0] : vector<2x8x128xf32> to vector<8x128xf32>
    %87 = arith.addf %84, %86 : vector<8x128xf32>
    %c0_43 = arith.constant 0 : index
    %c0_44 = arith.constant 0 : index
    %c0_45 = arith.constant 0 : index
    %88 = vector.load %arg3[%c0_43, %c0_44, %c0_45] : memref<1x8x128xf32, #tpu.memory_space<vmem>>, vector<1x8x128xf32>
    %89 = vector.shape_cast %88 : vector<1x8x128xf32> to vector<8x128xf32>
    %90 = vector.shape_cast %87 : vector<8x128xf32> to vector<1x8x128xf32>
    tpu.vector_store %arg3[%c0_43, %c0_44, %c0_45], %90 {strides = array<i32>} : memref<1x8x128xf32, #tpu.memory_space<vmem>>, vector<1x8x128xf32>,
    return
  }
  func.func @transform_0(%arg0: i32, %arg1: i32) -> (i32, i32, i32) {
    %c1_i32 = arith.constant 1 : i32
    %0 = arith.muli %arg0, %c1_i32 : i32
    %1 = arith.addi %0, %arg1 : i32
    %c0_i32 = arith.constant 0 : i32
    %c0_i32_0 = arith.constant 0 : i32
    %c0_i32_1 = arith.constant 0 : i32
    return %c0_i32, %1, %c0_i32_0 : i32, i32, i32
  }
  func.func @transform_1(%arg0: i32, %arg1: i32) -> (i32, i32, i32) {
    %c0_i32 = arith.constant 0 : i32
    %c0_i32_0 = arith.constant 0 : i32
    %c0_i32_1 = arith.constant 0 : i32
    return %arg0, %c0_i32, %c0_i32_0 : i32, i32, i32
  }
}

</mosaic_0001>

<bundles_post_ra>
// kernel: _energy_gradient_loss_impl.1
= control target key start
LH: loop header
LB: loop body
LE: loop exit
PB: predicated region body
PF: predicated region fallthrough
CT: control target
= control target key end

     0   :  { %s351_s0 = inlined_call_operand.vmem [shape: f32[15,16,128], index: 0, kind: input, shape index: {}]   ;;  %s352_s1 = inlined_call_operand.vmem [shape: f32[1,8,128], index: 1, kind: output, shape index: {}]  }
   0x1   :  { %v225_v0 = vld [vmem:[%s351_s0] sm:$0xff]  ;;  %v230_v1 = vld [vmem:[%s351_s0 + $0x8] sm:$0xff]  ;;  %v235_v2 = vld [vmem:[%s351_s0 + $0x10] sm:$0xff] }
   0x2   :  { %v240_v3 = vld [vmem:[%s351_s0 + $0x18] sm:$0xff]  ;;  %v177_v4 = vld [vmem:[%s351_s0 + $0x30] sm:$0xff]  ;;  %v179_v6 = vld [vmem:[%s351_s0 + $0x40] sm:$0xff] }
   0x3   :  { %v178_v5 = vld [vmem:[%s351_s0 + $0x38] sm:$0xff]  ;;  %v183_v7 = vld [vmem:[%s351_s0 + $0x60] sm:$0xff]  ;;  %v180_v8 = vld [vmem:[%s351_s0 + $0x48] sm:$0xff]  ;;  %v79_v18 = vmul.f32 %v177_v4, %v225_v0  ;;  %v89_v22 = vmul.f32 %v179_v6, %v225_v0 }
   0x4   :  { %v184_v9 = vld [vmem:[%s351_s0 + $0x68] sm:$0xff]  ;;  %v185_v10 = vld [vmem:[%s351_s0 + $0x70] sm:$0xff]  ;;  %v186_v11 = vld [vmem:[%s351_s0 + $0x78] sm:$0xff]  ;;  %v81_v19 = vmul.f32 %v183_v7, %v235_v2  ;;  %v80_v20 = vmul.f32 %v178_v5, %v230_v1  ;;  %v90_v31 = vmul.f32 %v180_v8, %v230_v1 }
   0x5   :  { %v269_v12 = vld [vmem:[%s351_s0 + $0xc0] sm:$0xff]  ;;  %v274_v13 = vld [vmem:[%s351_s0 + $0xc8] sm:$0xff]  ;;  %v197_v14 = vld [vmem:[%s351_s0 + $0xd0] sm:$0xff]  ;;  %v82_v21 = vmul.f32 %v184_v9, %v240_v3  ;;  %v91_v23 = vmul.f32 %v185_v10, %v235_v2  ;;  %v92_v32 = vmul.f32 %v186_v11, %v240_v3 }
   0x6   :  { %v198_v15 = vld [vmem:[%s351_s0 + $0xd8] sm:$0xff]  ;;  %v199_v16 = vld [vmem:[%s351_s0 + $0xe0] sm:$0xff]  ;;  %v200_v17 = vld [vmem:[%s351_s0 + $0xe8] sm:$0xff]  ;;  %v109_v27 = vmul.f32 %v269_v12, %v269_v12  ;;  %v110_v28 = vmul.f32 %v274_v13, %v274_v13  ;;  %v111_v29 = vmul.f32 %v197_v14, %v197_v14  ;;  %v83_v38 = vadd.f32 %v81_v19, %v79_v18 }
   0x7   :  { %v175_v24 = vld [vmem:[%s351_s0 + $0x20] sm:$0xff]  ;;  %v189_v25 = vld [vmem:[%s351_s0 + $0x90] sm:$0xff]  ;;  %v112_v30 = vmul.f32 %v198_v15, %v198_v15  ;;  %v115_v33 = vmul.f32 %v199_v16, %v199_v16  ;;  %v116_v34 = vmul.f32 %v200_v17, %v200_v17  ;;  %v176_v35 = vld [vmem:[%s351_s0 + $0x28] sm:$0xff]  ;;  %v84_v41 = vadd.f32 %v82_v21, %v80_v20 }
   0x8   :  { %v191_v26 = vld [vmem:[%s351_s0 + $0xa0] sm:$0xff]  ;;  %v190_v36 = vld [vmem:[%s351_s0 + $0x98] sm:$0xff]  ;;  %v192_v37 = vld [vmem:[%s351_s0 + $0xa8] sm:$0xff]  ;;  %v113_v39 = vadd.f32 %v111_v29, %v109_v27  ;;  %v85_v42 = vmul.f32 %v189_v25, %v175_v24  ;;  %v93_v43 = vadd.f32 %v91_v23, %v89_v22  ;;  %v94_v48 = vadd.f32 %v92_v32, %v90_v31 }
   0x9   :  { %v114_v40 = vadd.f32 %v112_v30, %v110_v28  ;;  %v95_v44 = vmul.f32 %v191_v26, %v175_v24  ;;  %v86_v47 = vmul.f32 %v190_v36, %v176_v35  ;;  %v96_v49 = vmul.f32 %v192_v37, %v176_v35  ;;  %v181_v52 = vld [vmem:[%s351_s0 + $0x50] sm:$0xff]  ;;  %v187_v53 = vld [vmem:[%s351_s0 + $0x80] sm:$0xff]  ;;  %v182_v54 = vld [vmem:[%s351_s0 + $0x58] sm:$0xff] }
   0xa   :  { %v117_v45 = vadd.f32 %v115_v33, %v113_v39  ;;  %vm125_vm0 = vcmp.gt.f32.partialorder %v113_v39, 0.0  ;;  %v188_v55 = vld [vmem:[%s351_s0 + $0x88] sm:$0xff]  ;;  %v87_v56 = vadd.f32 %v85_v42, %v83_v38  ;;  %v99_v60 = vmul.f32 %v181_v52, %v225_v0  ;;  %v193_v62 = vld [vmem:[%s351_s0 + $0xb0] sm:$0xff]  ;;  %v194_v5 = vld [vmem:[%s351_s0 + $0xb8] sm:$0xff] }
   0xb   :  { %v118_v46 = vadd.f32 %v116_v34, %v114_v40  ;;  %vm126_vm1 = vcmp.gt.f32.partialorder %v114_v40, 0.0  ;;  %v127_v50 = vsel %vm125_vm0, %v113_v39, 1.0  ;;  %v97_v57 = vadd.f32 %v95_v44, %v93_v43 }
   0xc   :  { %204 = vrsqrt.f32 %v117_v45  ;;  %v128_v51 = vsel %vm126_vm1, %v114_v40, 1.0  ;;  %v88_v58 = vadd.f32 %v86_v47, %v84_v41  ;;  %v98_v59 = vadd.f32 %v96_v49, %v94_v48 }
   0xd   :  { %206 = vrsqrt.f32 %v118_v46  ;;  %v101_v61 = vmul.f32 %v187_v53, %v235_v2  ;;  %v100_v63 = vmul.f32 %v182_v54, %v230_v1  ;;  %v102_v4 = vmul.f32 %v188_v55, %v240_v3 }
   0xe   :  { %208 = vrsqrt.f32 %v127_v50  ;;  %v137_v6 = vmul.f32 %v269_v12, %v87_v56  ;;  %v139_v7 = vmul.f32 %v197_v14, %v97_v57  ;;  %v138_v8 = vmul.f32 %v274_v13, %v88_v58 }
   0xf   :  { %210 = vrsqrt.f32 %v128_v51  ;;  %v140_v0 = vmul.f32 %v198_v15, %v98_v59  ;;  %v103_v9 = vadd.f32 %v101_v61, %v99_v60  ;;  %v105_v2 = vmul.f32 %v193_v62, %v175_v24 }
  0x10   :  { %vm119_vm2 = vcmp.gt.f32.partialorder %v117_v45, 0.0  ;;  %v104_v10 = vadd.f32 %v102_v4, %v100_v63  ;;  %v106_v11 = vmul.f32 %v194_v5, %v176_v35  ;;  %vm120_vm3 = vcmp.gt.f32.partialorder %v118_v46, 0.0 }
  0x11   :  { %v141_v1 = vadd.f32 %v139_v7, %v137_v6  ;;  %v142_v18 = vadd.f32 %v140_v0, %v138_v8  ;;  %v107_v20 = vadd.f32 %v105_v2, %v103_v9 }
  0x12   :  { %v108_v14 = vadd.f32 %v106_v11, %v104_v10 }
  0x16   :  { %v205_v16 = vpop.eup %204 }
  0x17   :  { %v207_v17 = vpop.eup %206  ;;  %v123_v3 = vsel %vm119_vm2, %v205_v16, 0.0 }
  0x18   :  { %v209_v19 = vpop.eup %208  ;;  %v124_v21 = vsel %vm120_vm3, %v207_v17, 0.0  ;;  %v135_v22 = vmul.f32 %v123_v3, %v117_v45  ;;  %v143_v26 = vmul.f32 %v141_v1, %v123_v3 }
  0x19   :  { %v211_v23 = vpop.eup %210  ;;  %v131_v25 = vmul.f32 %v209_v19, %v269_v12  ;;  %v136_v15 = vmul.f32 %v124_v21, %v118_v46  ;;  %v144_v29 = vmul.f32 %v142_v18, %v124_v21 }
  0x1a   :  { %v132_v24 = vmul.f32 %v211_v23, %v274_v13  ;;  %v201_v27 = vadd.f32 -1.1, %v135_v22 }
  0x1b   :  { %v133_v28 = vsel %vm125_vm0, %v131_v25, 1.0  ;;  %v202_v30 = vadd.f32 -1.1, %v136_v15 }
  0x1c   :  { %v134_v31 = vsel %vm126_vm1, %v132_v24, 1.0  ;;  %v145_v32 = vmul.f32 %v133_v28, %v107_v20  ;;  %v151_v35 = vmax.f32 %v201_v27, 0.0 }
  0x1d   :  { %v146_v33 = vmul.f32 %v134_v31, %v108_v14  ;;  %v152_v37 = vmax.f32 %v202_v30, 0.0 }
  0x1e   :  { %v147_v34 = vadd.f32 %v145_v32, %v143_v26 }
  0x1f   :  { %v148_v36 = vadd.f32 %v146_v33, %v144_v29 }
  0x20   :  { %v153_v38 = vmax.f32 %v147_v34, 0.0 }
  0x21   :  { %v154_v41 = vmax.f32 %v148_v36, 0.0 }
  0x22   :  { %v155_v12 = vmul.f32 %v153_v38, %v151_v35 }
  0x23   :  { %v156_v42 = vmul.f32 %v154_v41, %v152_v37 }
  0x24   :  { %v157_v43 = vmul.f32 %v155_v12, %v151_v35 }
  0x25   :  { %v158_v13 = vmul.f32 %v156_v42, %v152_v37 }
  0x27   :  { %v160_v44 = vadd.f32 %v158_v13, %v157_v43 }
  0x29   :  { %162 = vst [vmem:[%s352_s1] sm:$0xff] %v160_v44 }

</bundles_post_ra>
